<compile_context>
chip_gen: v6e
topology: v6e:2x2x1
jax: 0.10.0
libtpu: 0.0.40
codegen_flags: <defaults>
</compile_context>

<pallas_src>
import functools

import jax
import jax.numpy as jnp
from jax.experimental import pallas as pl
from jax.experimental.pallas import tpu as pltpu


# ----------------------------------------------------------------------------
# Pallas kernels
# ----------------------------------------------------------------------------
def _matmul_kernel(a_ref, b_ref, bias_ref, *rest, relu, has_res):
    """acc += a @ b over K steps; finalize with bias [+res][+relu] at last K."""
    if has_res:
        res_ref, o_ref, acc_ref = rest
    else:
        o_ref, acc_ref = rest

    @pl.when(pl.program_id(1) == 0)
    def _():
        acc_ref[...] = jnp.zeros_like(acc_ref)

    acc_ref[...] += jnp.dot(
        a_ref[...], b_ref[...], preferred_element_type=jnp.float32
    )

    @pl.when(pl.program_id(1) == pl.num_programs(1) - 1)
    def _():
        out = acc_ref[...] + bias_ref[...]
        if has_res:
            out = out + res_ref[...].astype(jnp.float32)
        if relu:
            out = jnp.maximum(out, 0.0)
        o_ref[...] = out.astype(o_ref.dtype)


def _maxpool_kernel(p_ref, o_ref):
    o_ref[...] = jnp.max(p_ref[...], axis=1).astype(o_ref.dtype)


def _avgpool_kernel(x_ref, o_ref, *, hw):
    s = jnp.sum(x_ref[...].astype(jnp.float32), axis=1)
    o_ref[...] = (s * (1.0 / hw)).astype(o_ref.dtype)


# ----------------------------------------------------------------------------
# Fused matmul wrapper (conv-as-matmul / fc): bf16 MXU, f32 accumulate
# ----------------------------------------------------------------------------
def _choose_tk(k):
    """K tile: only tile very large K (layer3/4); tile must be 128-aligned."""
    if k <= 1536 or k % 128 != 0:
        return k
    for tk in (1152, 1024, 768, 512, 384, 256, 128):
        if k % tk == 0:
            return tk
    return k


def _pad_rows(x, m_pad):
    m = x.shape[0]
    if m_pad == m:
        return x
    return jnp.pad(x, ((0, m_pad - m), (0, 0)))


def pallas_matmul(a, b, bias, *, relu=False, residual=None,
                  out_dtype=jnp.bfloat16):
    """(M,K) @ (K,N) + bias(N,) [+ residual(M,N)], optional ReLU."""
    m, k = a.shape
    n = b.shape[1]

    # M tiling: pad rows to a multiple of 128 so every layer gets a real grid.
    if m > 128:
        tm = 128
        m_pad = -(-m // tm) * tm
    else:
        tm = m
        m_pad = m

    tk = _choose_tk(k)
    k_steps = k // tk
    grid = (m_pad // tm, k_steps)

    a = _pad_rows(a.astype(jnp.bfloat16), m_pad)
    b = b.astype(jnp.bfloat16)
    bias2 = bias.reshape(1, n).astype(jnp.float32)

    in_specs = [
        pl.BlockSpec((tm, tk), lambda i, s: (i, s)),
        pl.BlockSpec((tk, n), lambda i, s: (s, 0)),
        pl.BlockSpec((1, n), lambda i, s: (0, 0)),
    ]
    args = [a, b, bias2]
    if residual is not None:
        r = _pad_rows(residual.astype(jnp.bfloat16), m_pad)
        in_specs.append(pl.BlockSpec((tm, n), lambda i, s: (i, 0)))
        args.append(r)

    kernel = functools.partial(
        _matmul_kernel, relu=relu, has_res=residual is not None
    )
    out = pl.pallas_call(
        kernel,
        out_shape=jax.ShapeDtypeStruct((m_pad, n), out_dtype),
        grid_spec=pltpu.PrefetchScalarGridSpec(
            num_scalar_prefetch=0,
            grid=grid,
            in_specs=in_specs,
            out_specs=pl.BlockSpec((tm, n), lambda i, s: (i, 0)),
            scratch_shapes=[pltpu.VMEM((tm, n), jnp.float32)],
        ),
        compiler_params=pltpu.CompilerParams(
            dimension_semantics=("parallel", "arbitrary"),
        ),
    )(*args)

    if m_pad != m:
        out = out[:m]
    return out


# ----------------------------------------------------------------------------
# Glue: im2col patch extraction (plain JAX, bf16)
# ----------------------------------------------------------------------------
def im2col(x, kh, kw, stride, pad, pad_value=0.0):
    """x: (N,H,W,C) NHWC -> patches (N,OH,OW,kh*kw,C)."""
    n, h, w, c = x.shape
    xp = jnp.pad(
        x, ((0, 0), (pad, pad), (pad, pad), (0, 0)), constant_values=pad_value
    )
    hp, wp = h + 2 * pad, w + 2 * pad
    oh = (hp - kh) // stride + 1
    ow = (wp - kw) // stride + 1
    cols = []
    for i in range(kh):
        for j in range(kw):
            cols.append(
                xp[:, i : i + stride * oh : stride, j : j + stride * ow : stride, :]
            )
    p = jnp.stack(cols, axis=3)  # (n, oh, ow, kh*kw, c)
    return p, (n, oh, ow)


# ----------------------------------------------------------------------------
# Fused conv + BN(+res)(+relu), maxpool, avgpool wrappers
# ----------------------------------------------------------------------------
def conv_bn_act(x, params, stride, pad, relu=True, residual=None):
    w2d, bias = params["w"], params["b"]           # pre-folded at init
    kh, kw, cin = params["kh"], params["kw"], params["cin"]
    cout = w2d.shape[1]
    p, (n, oh, ow) = im2col(x, kh, kw, stride, pad)
    a = p.reshape(n * oh * ow, kh * kw * cin)
    res = None if residual is None else residual.reshape(n * oh * ow, cout)
    out = pallas_matmul(a, w2d, bias, relu=relu, residual=res)
    return out.reshape(n, oh, ow, cout)


def maxpool_3x3_s2_p1(x):
    n, h, w, c = x.shape
    p, (n, oh, ow) = im2col(x, 3, 3, 2, 1, pad_value=-jnp.inf)
    m = n * oh * ow
    pr = p.reshape(m, 9, c)
    if m > 256:
        tm = 256
        m_pad = -(-m // tm) * tm
        if m_pad != m:
            pr = jnp.pad(pr, ((0, m_pad - m), (0, 0), (0, 0)))
    else:
        tm = m
        m_pad = m
    # TODO(synk): C=64 output is not lane-dense (128 lanes); folding spatial
    # into lanes would remove masked partial stores.
    out = pl.pallas_call(
        _maxpool_kernel,
        out_shape=jax.ShapeDtypeStruct((m_pad, c), x.dtype),
        grid=(m_pad // tm,),
        in_specs=[pl.BlockSpec((tm, 9, c), lambda i: (i, 0, 0))],
        out_specs=pl.BlockSpec((tm, c), lambda i: (i, 0)),
        compiler_params=pltpu.CompilerParams(
            dimension_semantics=("parallel",),
        ),
    )(pr)
    if m_pad != m:
        out = out[:m]
    return out.reshape(n, oh, ow, c)


def global_avgpool(x):
    n, h, w, c = x.shape
    xr = x.reshape(n, h * w, c)
    return pl.pallas_call(
        functools.partial(_avgpool_kernel, hw=h * w),
        out_shape=jax.ShapeDtypeStruct((n, c), jnp.bfloat16),
        grid=(1,),
        in_specs=[pl.BlockSpec((n, h * w, c), lambda i: (0, 0, 0))],
        out_specs=pl.BlockSpec((n, c), lambda i: (0, 0)),
    )(xr)


# ----------------------------------------------------------------------------
# Deterministic parameter init (synthetic, no checkpoint load)
# BN folded into conv weights at init; weights stored as bf16 (K, N).
# ----------------------------------------------------------------------------
class KeyGen:
    def __init__(self, seed):
        self.key = jax.random.PRNGKey(seed)

    def __call__(self):
        self.key, sub = jax.random.split(self.key)
        return sub


def init_conv_bn(kg, kh, kw, cin, cout, eps=1e-5):
    fan_in = kh * kw * cin
    w = jax.random.normal(kg(), (kh, kw, cin, cout), jnp.float32) * (2.0 / fan_in) ** 0.5
    gamma = jax.random.uniform(kg(), (cout,), jnp.float32, 0.5, 1.5)
    beta = jax.random.normal(kg(), (cout,), jnp.float32) * 0.1
    mean = jax.random.normal(kg(), (cout,), jnp.float32) * 0.1
    var = jax.random.uniform(kg(), (cout,), jnp.float32, 0.5, 1.5)
    scale = gamma / jnp.sqrt(var + eps)       # eval-mode BN folded
    bias = beta - mean * scale
    w_folded = (w * scale).reshape(kh * kw * cin, cout).astype(jnp.bfloat16)
    return {"w": w_folded, "b": bias, "kh": kh, "kw": kw, "cin": cin}


def init_linear(kg, cin, cout):
    bound = 1.0 / (cin ** 0.5)
    w = jax.random.uniform(kg(), (cin, cout), jnp.float32, -bound, bound)
    b = jax.random.uniform(kg(), (cout,), jnp.float32, -bound, bound)
    return {"w": w.astype(jnp.bfloat16), "b": b}


def init_resnet18_params(seed=0, num_classes=40):
    kg = KeyGen(seed)
    params = {"conv1": init_conv_bn(kg, 7, 7, 3, 64)}
    cfg = [(64, 64, 1), (64, 128, 2), (128, 256, 2), (256, 512, 2)]
    layers = []
    for cin, cout, stride in cfg:
        blocks = []
        ds = init_conv_bn(kg, 1, 1, cin, cout) if (stride != 1 or cin != cout) else None
        blocks.append(
            (init_conv_bn(kg, 3, 3, cin, cout), init_conv_bn(kg, 3, 3, cout, cout), ds, stride)
        )
        blocks.append(
            (init_conv_bn(kg, 3, 3, cout, cout), init_conv_bn(kg, 3, 3, cout, cout), None, 1)
        )
        layers.append(blocks)
    params["layers"] = layers
    params["fc"] = init_linear(kg, 512, num_classes)
    return params


# ----------------------------------------------------------------------------
# ResNet-18 forward
# ----------------------------------------------------------------------------
def basic_block(x, conv1_p, conv2_p, downsample_p, stride):
    if downsample_p is not None:
        identity = conv_bn_act(x, downsample_p, stride=stride, pad=0, relu=False)
    else:
        identity = x
    out = conv_bn_act(x, conv1_p, stride=stride, pad=1, relu=True)
    out = conv_bn_act(out, conv2_p, stride=1, pad=1, relu=True, residual=identity)
    return out


def celeba_model18_forward(x_nchw, params):
    # x_nchw: (N, 3, H, W) — PyTorch convention; convert to NHWC bf16 internally.
    x = jnp.transpose(x_nchw, (0, 2, 3, 1)).astype(jnp.bfloat16)
    x = conv_bn_act(x, params["conv1"], stride=2, pad=3, relu=True)  # conv1+bn1+relu
    x = maxpool_3x3_s2_p1(x)
    for blocks in params["layers"]:
        for (c1, c2, ds, stride) in blocks:
            x = basic_block(x, c1, c2, ds, stride)
    x = global_avgpool(x)                        # (N, 512) bf16
    fc = params["fc"]
    logits = pallas_matmul(x, fc["w"], fc["b"], relu=False, out_dtype=jnp.float32)
    return logits                                # (N, 40) f32


if __name__ == "__main__":
    key = jax.random.PRNGKey(0)
    x = jax.random.normal(key, (2, 3, 32, 32), jnp.float32)  # small NCHW input
    params = init_resnet18_params(seed=0, num_classes=40)

    out = celeba_model18_forward(x, params)
    out = jax.block_until_ready(out)

    assert out.shape == (2, 40), out.shape
    assert out.dtype == jnp.float32
    assert bool(jnp.all(jnp.isfinite(out)))
    print("KERNEL_OK")
</pallas_src>

<mosaic_0001>
module attributes {stable_mosaic.version = 11 : i64} {
  func.func @_matmul_kernel(%arg0: i32, %arg1: i32, %arg2: memref<128x147xbf16, #tpu.memory_space<vmem>>, %arg3: memref<147x64xbf16, #tpu.memory_space<vmem>>, %arg4: memref<1x64xf32, #tpu.memory_space<vmem>>, %arg5: memref<128x64xbf16, #tpu.memory_space<vmem>>, %arg6: memref<128x64xf32, #tpu.memory_space<vmem>>) attributes {dimension_semantics = [#tpu.dimension_semantics<parallel>, #tpu.dimension_semantics<arbitrary>], iteration_bounds = array<i64: 4, 1>, scalar_prefetch = 0 : i64, scratch_operands = 1 : i64, tpu.core_type = #tpu.core_type<tc>, window_params = [{transform_indices = @transform_0, window_bounds = array<i64: 128, 147>}, {transform_indices = @transform_1, window_bounds = array<i64: 147, 64>}, {pipeline_mode = #tpu.pipeline_mode<synchronous>, transform_indices = @transform_2, window_bounds = array<i64: 1, 64>}, {transform_indices = @transform_3, window_bounds = array<i64: 128, 64>}]} {
    %c0_i32 = arith.constant 0 : i32
    %0 = arith.cmpi eq, %arg1, %c0_i32 : i32
    %1 = arith.extui %0 : i1 to i32
    %c0_i32_0 = arith.constant 0 : i32
    %2 = arith.cmpi ne, %1, %c0_i32_0 : i32
    scf.if %2 {
      %cst_10 = arith.constant 0.000000e+00 : f32
      %12 = vector.broadcast %cst_10 : f32 to vector<128x64xf32>
      %c0_11 = arith.constant 0 : index
      %c0_12 = arith.constant 0 : index
      %13 = vector.load %arg6[%c0_11, %c0_12] : memref<128x64xf32, #tpu.memory_space<vmem>>, vector<128x64xf32>
      tpu.vector_store %arg6[%c0_11, %c0_12], %12 {strides = array<i32>} : memref<128x64xf32, #tpu.memory_space<vmem>>, vector<128x64xf32>,
    } else {
    }
    %c0 = arith.constant 0 : index
    %c0_1 = arith.constant 0 : index
    %3 = vector.load %arg6[%c0, %c0_1] : memref<128x64xf32, #tpu.memory_space<vmem>>, vector<128x64xf32>
    %c0_2 = arith.constant 0 : index
    %c0_3 = arith.constant 0 : index
    %4 = vector.load %arg2[%c0_2, %c0_3] : memref<128x147xbf16, #tpu.memory_space<vmem>>, vector<128x147xbf16>
    %c0_4 = arith.constant 0 : index
    %c0_5 = arith.constant 0 : index
    %5 = vector.load %arg3[%c0_4, %c0_5] : memref<147x64xbf16, #tpu.memory_space<vmem>>, vector<147x64xbf16>
    %cst = arith.constant dense<0.000000e+00> : vector<128x64xf32>
    %6 = tpu.matmul %4, %5, %cst {dimension_numbers = #tpu.dot_dimension_numbers<[1], [0], [0], [1], [0, 0, 1, 1], [], []>} : vector<128x147xbf16>, vector<147x64xbf16>, vector<128x64xf32> -> vector<128x64xf32>
    %7 = arith.addf %3, %6 : vector<128x64xf32>
    %c0_6 = arith.constant 0 : index
    %c0_7 = arith.constant 0 : index
    %8 = vector.load %arg6[%c0_6, %c0_7] : memref<128x64xf32, #tpu.memory_space<vmem>>, vector<128x64xf32>
    tpu.vector_store %arg6[%c0_6, %c0_7], %7 {strides = array<i32>} : memref<128x64xf32, #tpu.memory_space<vmem>>, vector<128x64xf32>,
    %c0_i32_8 = arith.constant 0 : i32
    %9 = arith.cmpi eq, %arg1, %c0_i32_8 : i32
    %10 = arith.extui %9 : i1 to i32
    %c0_i32_9 = arith.constant 0 : i32
    %11 = arith.cmpi ne, %10, %c0_i32_9 : i32
    scf.if %11 {
      %c0_10 = arith.constant 0 : index
      %c0_11 = arith.constant 0 : index
      %12 = vector.load %arg6[%c0_10, %c0_11] : memref<128x64xf32, #tpu.memory_space<vmem>>, vector<128x64xf32>
      %c0_12 = arith.constant 0 : index
      %c0_13 = arith.constant 0 : index
      %13 = vector.load %arg4[%c0_12, %c0_13] : memref<1x64xf32, #tpu.memory_space<vmem>>, vector<1x64xf32>
      %14 = vector.broadcast %13 : vector<1x64xf32> to vector<128x64xf32>
      %15 = arith.addf %12, %14 : vector<128x64xf32>
      %cst_14 = arith.constant 0.000000e+00 : f32
      %16 = vector.broadcast %cst_14 : f32 to vector<128x64xf32>
      %17 = arith.maximumf %15, %16 : vector<128x64xf32>
      %18 = arith.truncf %17 : vector<128x64xf32> to vector<128x64xbf16>
      %c0_15 = arith.constant 0 : index
      %c0_16 = arith.constant 0 : index
      %19 = vector.load %arg5[%c0_15, %c0_16] : memref<128x64xbf16, #tpu.memory_space<vmem>>, vector<128x64xbf16>
      tpu.vector_store %arg5[%c0_15, %c0_16], %18 {strides = array<i32>} : memref<128x64xbf16, #tpu.memory_space<vmem>>, vector<128x64xbf16>,
    } else {
    }
    return
  }
  func.func @transform_0(%arg0: i32, %arg1: i32) -> (i32, i32) {
    %c0_i32 = arith.constant 0 : i32
    return %arg0, %arg1 : i32, i32
  }
  func.func @transform_1(%arg0: i32, %arg1: i32) -> (i32, i32) {
    %c0_i32 = arith.constant 0 : i32
    %c0_i32_0 = arith.constant 0 : i32
    return %arg1, %c0_i32 : i32, i32
  }
  func.func @transform_2(%arg0: i32, %arg1: i32) -> (i32, i32) {
    %c0_i32 = arith.constant 0 : i32
    %c0_i32_0 = arith.constant 0 : i32
    %c0_i32_1 = arith.constant 0 : i32
    return %c0_i32, %c0_i32_0 : i32, i32
  }
  func.func @transform_3(%arg0: i32, %arg1: i32) -> (i32, i32) {
    %c0_i32 = arith.constant 0 : i32
    %c0_i32_0 = arith.constant 0 : i32
    return %arg0, %c0_i32 : i32, i32
  }
}

</mosaic_0001>

<bundles_post_ra>
// kernel: tpu_custom_call.1
= control target key start
LH: loop header
LB: loop body
LE: loop exit
PB: predicated region body
PF: predicated region fallthrough
CT: control target
= control target key end

     0   :  { %s1025_s12 = smov 0   ;;  %s1027_s13 = smov 0   ;;  %s1225_s0 = inlined_call_operand.vmem [shape: bf16[512,147], index: 0, kind: input, shape index: {}]   ;;  %s1226_s1 = inlined_call_operand.vmem [shape: bf16[147,64], index: 1, kind: input, shape index: {}]   ;;  %s1227_s2 = inlined_call_operand.vmem [shape: f32[1,64], index: 2, kind: input, shape index: {}]   ;;  %s1228_s3 = inlined_call_operand.vmem [shape: bf16[512,64], index: 3, kind: output, shape index: {}]  }
   0x1   :  { %s1029_s14 = smov 0  }
   0x2 LB: > { %s25_s15 = sadd.s32 1, %s996_s13  ;;  %p821_p0 = scmp.ge.s32.totalorder %s1000_s14, 1  ;;  %s1000_s14 = sphi %s1029_s14, %s13_s14   ;;  %s996_s13 = sphi %s1027_s13, %s1230_s13   ;;  %s992_s12 = sphi %s1025_s12, %s1229_s12  }
   0x3   : > { %p27_p1 = scmp.ge.s32.totalorder %s25_s15, 4  ;;  %p169_p2 = scmp.lt.s32.totalorder %s1000_s14, 5 }
   0x5   : > { %s1232_s15 = smov (%p27_p1, %s25_s15), 0  ;;  %p170_p3 = pnand %p821_p0, %p169_p2 }
   0x6   : > { %s822_s22 = sshll.u32 (!%p170_p3), %s992_s12, 4 }
   0x7   : > { %173 = sbr.rel (%p170_p3) target bundleno = 292 (0x124), region = 32  ;;  %p205_p4 = scmp.lt.s32.totalorder (!%p170_p3), %s822_s22, 63 }
   0xc   : > { %v944_v0 = vld [vmem:[%s1226_s1 + $0x38] sm:$0xff]   ;;  %v1002_v1 = vmov 0   ;;  %v945_v2 = vld [vmem:[%s1226_s1 + $0x30] sm:$0xff]   ;;  %v946_v3 = vld [vmem:[%s1226_s1 + $0x28] sm:$0xff]   ;;  %s1234_s22 = smov (!%p205_p4, %s822_s22), 63  ;;  %vm232_vm0 = vcmask 523264  }
   0xd   : > { %461 = vmatprep.subr.bf16.mxu0 %v1002_v1  ;;  %897 = vmatprep.subr.bf16.mxu1 %v1002_v1  ;;  %v947_v4 = vld [vmem:[%s1226_s1 + $0x20] sm:$0xff]   ;;  %s880_s25 = sshll.u32 %s1234_s22, 3  ;;  %v1003_v5 = vmov 0.0   ;;  %v948_v6 = vld [vmem:[%s1226_s1 + $0x18] sm:$0xff]   ;;  %vm429_vm1 = vcmask 154624   ;;  %v949_v9 = vld [vmem:[%s1226_s1 + $0x10] sm:$0xff]  }
   0xe   : > { %462 = vmatpush1.bf16.msra.mxu0 %v944_v0  ;;  %907 = vmatpush1.bf16.msra.mxu1 %v944_v0  ;;  %233 = vst.msk [vmem:[#allocation2] sm:$0xff] %vm232_vm0, %v1003_v5  ;;  %234 = vst.msk [vmem:[#allocation2 + $0x8] sm:$0xff] %vm232_vm0, %v1003_v5  ;;  %s1085_s28 = scalar_lea.vmem %s1225_s0, %s880_s25  ;;  %vm454_vm2 = vcmask 1040384   ;;  %v950_v10 = vld [vmem:[%s1226_s1 + $0x8] sm:$0xff]   ;;  %vm455_vm3 = vcmask 1041408   ;;  %v1004_v11 = vmov 65535  }
   0xf   : > { %463 = vmatprep.subr.bf16.mxu0 %v1002_v1  ;;  %898 = vmatprep.subr.bf16.mxu1 %v1002_v1  ;;  %235 = vst.msk [vmem:[#allocation2 + $0x10] sm:$0xff] %vm232_vm0, %v1003_v5  ;;  %236 = vst.msk [vmem:[#allocation2 + $0x18] sm:$0xff] %vm232_vm0, %v1003_v5  ;;  %v956_v7 = vld [vmem:[%s1085_s28 + $0x4] ss:$8 sps:$4 sm:$0xff]   ;;  %v456_v12 = vsel %vm454_vm2, 4294967295, %v1004_v11  ;;  %s826_s19 = sshll.u32 %s1234_s22, 2 }
  0x10   : > { %237 = vst.msk [vmem:[#allocation2 + $0x20] sm:$0xff] %vm232_vm0, %v1003_v5  ;;  %238 = vst.msk [vmem:[#allocation2 + $0x28] sm:$0xff] %vm232_vm0, %v1003_v5  ;;  %v959_v8 = vld [vmem:[%s1085_s28 + $0x44] ss:$8 sps:$4 sm:$0xff]   ;;  %853 = vmatprep.mubr.msk.bf16.mxu0 %vm429_vm1, %v956_v7  ;;  %v457_v15 = vsel %vm455_vm3, %v456_v12, 0  ;;  %s1158_s23 = scalar_lea.vmem %s1228_s3, %s826_s19  ;;  %vm713_vm4 = vcmask 519168  }
  0x11   : > { %239 = vst.msk [vmem:[#allocation2 + $0x30] sm:$0xff] %vm232_vm0, %v1003_v5  ;;  %240 = vst.msk [vmem:[#allocation2 + $0x38] sm:$0xff] %vm232_vm0, %v1003_v5  ;;  %857 = vmatprep.mubr.msk.bf16.mxu1 %vm429_vm1, %v959_v8  ;;  %v951_v13 = vld [vmem:[%s1226_s1] sm:$0xff]   ;;  %v952_v14 = vld [vmem:[%s1226_s1 + $0x48] ss:$0 sps:$4 sm:$0x33]  }
  0x12   : > { %464 = vmatpush1.bf16.msra.mxu0 %v945_v2  ;;  %908 = vmatpush1.bf16.msra.mxu1 %v945_v2  ;;  %241 = vst.msk [vmem:[#allocation2 + $0x40] sm:$0xff] %vm232_vm0, %v1003_v5  ;;  %242 = vst.msk [vmem:[#allocation2 + $0x48] sm:$0xff] %vm232_vm0, %v1003_v5  ;;  %v459_v16 = vand.u32 %v952_v14, %v457_v15  ;;  %v953_v17 = vld [vmem:[%s1226_s1 + $0x40] sm:$0xff]   ;;  %v960_v20 = vld [vmem:[%s1085_s28 + $0x14] ss:$8 sps:$4 sm:$0xff]  }
  0x13   : > { %465 = vmatprep.subr.bf16.mxu0 %v1002_v1  ;;  %899 = vmatprep.subr.bf16.mxu1 %v1002_v1  ;;  %243 = vst.msk [vmem:[#allocation2 + $0x50] sm:$0xff] %vm232_vm0, %v1003_v5  ;;  %244 = vst.msk [vmem:[#allocation2 + $0x58] sm:$0xff] %vm232_vm0, %v1003_v5  ;;  %v954_v18 = vld [vmem:[%s1085_s28] ss:$8 sps:$4 sm:$0xff]   ;;  %v962_v21 = vld [vmem:[%s1085_s28 + $0x54] ss:$8 sps:$4 sm:$0xff]  }
  0x14   : > { %245 = vst.msk [vmem:[#allocation2 + $0x60] sm:$0xff] %vm232_vm0, %v1003_v5  ;;  %246 = vst.msk [vmem:[#allocation2 + $0x68] sm:$0xff] %vm232_vm0, %v1003_v5  ;;  %v957_v19 = vld [vmem:[%s1085_s28 + $0x40] ss:$8 sps:$4 sm:$0xff]   ;;  %v964_v22 = vld [vmem:[%s1085_s28 + $0x10] ss:$8 sps:$4 sm:$0xff]  }
  0x15   : > { %247 = vst.msk [vmem:[#allocation2 + $0x70] sm:$0xff] %vm232_vm0, %v1003_v5  ;;  %248 = vst.msk [vmem:[#allocation2 + $0x78] sm:$0xff] %vm232_vm0, %v1003_v5  ;;  %v965_v23 = vld [vmem:[%s1085_s28 + $0x50] ss:$8 sps:$4 sm:$0xff]   ;;  %v966_v24 = vld [vmem:[%s1085_s28 + $0x24] ss:$8 sps:$4 sm:$0xff]  }
  0x16   : > { %466 = vmatpush1.bf16.msra.mxu0 %v946_v3  ;;  %909 = vmatpush1.bf16.msra.mxu1 %v946_v3  ;;  %v968_v25 = vld [vmem:[%s1085_s28 + $0x64] ss:$8 sps:$4 sm:$0xff]   ;;  %v970_v26 = vld [vmem:[%s1085_s28 + $0x20] ss:$8 sps:$4 sm:$0xff]   ;;  %v972_v28 = vld [vmem:[%s1085_s28 + $0x34] ss:$8 sps:$4 sm:$0xff]  }
  0x17   : > { %467 = vmatprep.subr.bf16.mxu0 %v1002_v1  ;;  %900 = vmatprep.subr.bf16.mxu1 %v1002_v1  ;;  %v971_v27 = vld [vmem:[%s1085_s28 + $0x60] ss:$8 sps:$4 sm:$0xff]   ;;  %v974_v29 = vld [vmem:[%s1085_s28 + $0x74] ss:$8 sps:$4 sm:$0xff]   ;;  %v976_v30 = vld [vmem:[%s1085_s28 + $0x30] ss:$8 sps:$4 sm:$0xff]  }
  0x18   : > { %v977_v31 = vld [vmem:[%s1085_s28 + $0x70] ss:$8 sps:$4 sm:$0xff]   ;;  %v249_v32 = vld [vmem:[#allocation2] sm:$0xff]  ;;  %v250_v40 = vld [vmem:[#allocation2 + $0x8] sm:$0xff] }
  0x19   : > { %v257_v33 = vld [vmem:[#allocation2 + $0x40] sm:$0xff]  ;;  %v258_v41 = vld [vmem:[#allocation2 + $0x48] sm:$0xff]  ;;  %v251_v48 = vld [vmem:[#allocation2 + $0x10] sm:$0xff] }
  0x1a   : > { %468 = vmatpush1.bf16.msra.mxu0 %v947_v4  ;;  %910 = vmatpush1.bf16.msra.mxu1 %v947_v4  ;;  %v259_v49 = vld [vmem:[#allocation2 + $0x50] sm:$0xff]  ;;  %v1148_v50 = vld [vmem:[%s1227_s2] ss:$0 sm:$0xff]  ;;  %v252_v55 = vld [vmem:[#allocation2 + $0x18] sm:$0xff] }
  0x1b   : > { %469 = vmatprep.subr.bf16.mxu0 %v1002_v1  ;;  %901 = vmatprep.subr.bf16.mxu1 %v1002_v1  ;;  %v260_v60 = vld [vmem:[#allocation2 + $0x58] sm:$0xff]  ;;  %v253_v5 = vld [vmem:[#allocation2 + $0x20] sm:$0xff] }
  0x1e   : > { %470 = vmatpush1.bf16.msra.mxu0 %v948_v6  ;;  %911 = vmatpush1.bf16.msra.mxu1 %v948_v6 }
  0x1f   : > { %471 = vmatprep.subr.bf16.mxu0 %v1002_v1  ;;  %902 = vmatprep.subr.bf16.mxu1 %v1002_v1 }
  0x22   : > { %472 = vmatpush1.bf16.msra.mxu0 %v949_v9  ;;  %912 = vmatpush1.bf16.msra.mxu1 %v949_v9 }
  0x23   : > { %473 = vmatprep.subr.bf16.mxu0 %v1002_v1  ;;  %903 = vmatprep.subr.bf16.mxu1 %v1002_v1 }
  0x26   : > { %474 = vmatpush1.bf16.msra.mxu0 %v950_v10  ;;  %913 = vmatpush1.bf16.msra.mxu1 %v950_v10  ;;  %v261_v10 = vld [vmem:[#allocation2 + $0x60] sm:$0xff] }
  0x27   : > { %475 = vmatprep.subr.bf16.mxu0 %v1002_v1  ;;  %904 = vmatprep.subr.bf16.mxu1 %v1002_v1 }
  0x2a   : > { %476 = vmatpush1.bf16.msra.mxu0 %v951_v13  ;;  %914 = vmatpush1.bf16.msra.mxu1 %v951_v13 }
  0x2b   : > { %489 = vmatprep.subr.bf16.mxu0 %v1002_v1  ;;  %905 = vmatprep.subr.bf16.mxu1 %v1002_v1 }
  0x2e   : > { %490 = vmatpush2.bf16.msra.mxu0 %v459_v16  ;;  %915 = vmatpush2.bf16.msra.mxu1 %v459_v16 }
  0x2f   : > { %491 = vmatprep.subr.bf16.mxu0 %v1002_v1  ;;  %906 = vmatprep.subr.bf16.mxu1 %v1002_v1 }
  0x32   : > { %492 = vmatpush2.bf16.msra.mxu0 %v953_v17  ;;  %916 = vmatpush2.bf16.msra.mxu1 %v953_v17 }
  0x35   : > { %494 = vmatmul.mubr.bf16.vlgmr.msra.gmra.mxu0 %v954_v18  ;;  %526 = vmatmul.mubr.bf16.vlgmr.msra.gmra.mxu1 %v957_v19 }
  0x36   : > { %854 = vmatprep.mubr.msk.bf16.mxu0 %vm429_vm1, %v960_v20  ;;  %858 = vmatprep.mubr.msk.bf16.mxu1 %vm429_vm1, %v962_v21  ;;  %v254_v21 = vld [vmem:[#allocation2 + $0x28] sm:$0xff] }
  0x3d   : > { %502 = vmatmul.mubr.bf16.gmra.mxu0 %v964_v22  ;;  %534 = vmatmul.mubr.bf16.gmra.mxu1 %v965_v23 }
  0x3e   : > { %855 = vmatprep.mubr.msk.bf16.mxu0 %vm429_vm1, %v966_v24  ;;  %859 = vmatprep.mubr.msk.bf16.mxu1 %vm429_vm1, %v968_v25 }
  0x45   : > { %510 = vmatmul.mubr.bf16.gmra.mxu0 %v970_v26  ;;  %542 = vmatmul.mubr.bf16.gmra.mxu1 %v971_v27  ;;  %v262_v26 = vld [vmem:[#allocation2 + $0x68] sm:$0xff] }
  0x46   : > { %856 = vmatprep.mubr.msk.bf16.mxu0 %vm429_vm1, %v972_v28  ;;  %860 = vmatprep.mubr.msk.bf16.mxu1 %vm429_vm1, %v974_v29 }
  0x4d   : > { %518 = vmatmul.mubr.bf16.gmra.mxu0 %v976_v30  ;;  %550 = vmatmul.mubr.bf16.gmra.mxu1 %v977_v31 }
  0xf5   : > { %v495_v34 = vpop.f32.mrf.mxu0  ;;  %v527_v35 = vpop.f32.mrf.mxu1 }
  0xf6   : > { %v558_v36 = vadd.f32 %v495_v34, %v249_v32  ;;  %v566_v37 = vadd.f32 %v527_v35, %v257_v33 }
  0xf7   : > { %v497_v38 = vpop.f32.mrf.mxu0  ;;  %v529_v39 = vpop.f32.mrf.mxu1 }
  0xf8   : > { %575 = vst.msk [vmem:[#allocation2] sm:$0xff] %vm232_vm0, %v558_v36  ;;  %583 = vst.msk [vmem:[#allocation2 + $0x40] sm:$0xff] %vm232_vm0, %v566_v37  ;;  %v255_v37 = vld [vmem:[#allocation2 + $0x30] sm:$0xff] }
  0xf9   : > { %v498_v42 = vpop.f32.mrf.mxu0  ;;  %v530_v43 = vpop.f32.mrf.mxu1 }
  0xfa   : > { %v559_v44 = vadd.f32 %v498_v42, %v250_v40  ;;  %v567_v45 = vadd.f32 %v530_v43, %v258_v41  ;;  %v263_v42 = vld [vmem:[#allocation2 + $0x70] sm:$0xff] }
  0xfb   : > { %v500_v46 = vpop.f32.mrf.mxu0  ;;  %v532_v47 = vpop.f32.mrf.mxu1 }
  0xfc   : > { %576 = vst.msk [vmem:[#allocation2 + $0x8] sm:$0xff] %vm232_vm0, %v559_v44  ;;  %584 = vst.msk [vmem:[#allocation2 + $0x48] sm:$0xff] %vm232_vm0, %v567_v45 }
  0xfd   : > { %v503_v51 = vpop.f32.mrf.mxu0  ;;  %v535_v52 = vpop.f32.mrf.mxu1 }
  0xfe   : > { %v560_v53 = vadd.f32 %v503_v51, %v251_v48  ;;  %v568_v54 = vadd.f32 %v535_v52, %v259_v49 }
  0xff   : > { %v594_v56 = vld [vmem:[#allocation2] sm:$0xff]  ;;  %v505_v58 = vpop.f32.mrf.mxu0  ;;  %v537_v59 = vpop.f32.mrf.mxu1 }
 0x100   : > { %v602_v57 = vld [vmem:[#allocation2 + $0x40] sm:$0xff]  ;;  %v617_v61 = vadd.f32 %v1148_v50, %v594_v56  ;;  %577 = vst.msk [vmem:[#allocation2 + $0x10] sm:$0xff] %vm232_vm0, %v560_v53  ;;  %585 = vst.msk [vmem:[#allocation2 + $0x50] sm:$0xff] %vm232_vm0, %v568_v54  ;;  %v256_v54 = vld [vmem:[#allocation2 + $0x38] sm:$0xff] }
 0x101   : > { %v625_v62 = vadd.f32 %v1148_v50, %v602_v57  ;;  %v506_v63 = vpop.f32.mrf.mxu0  ;;  %v538_v0 = vpop.f32.mrf.mxu1  ;;  %v264_v59 = vld [vmem:[#allocation2 + $0x78] sm:$0xff] }
 0x102   : > { %v633_v1 = vmax.f32 %v617_v61, 0.0  ;;  %v561_v3 = vadd.f32 %v506_v63, %v252_v55  ;;  %v569_v4 = vadd.f32 %v538_v0, %v260_v60 }
 0x103   : > { %v641_v2 = vmax.f32 %v625_v62, 0.0  ;;  %v595_v6 = vld [vmem:[#allocation2 + $0x8] sm:$0xff]  ;;  %v508_v8 = vpop.f32.mrf.mxu0  ;;  %v540_v9 = vpop.f32.mrf.mxu1 }
 0x104   : > { %v603_v7 = vld [vmem:[#allocation2 + $0x48] sm:$0xff]  ;;  %v881_v11 = vpack.c.bf16 %v633_v1, %v633_v1  ;;  %v618_v13 = vadd.f32 %v1148_v50, %v595_v6  ;;  %578 = vst.msk [vmem:[#allocation2 + $0x18] sm:$0xff] %vm232_vm0, %v561_v3  ;;  %586 = vst.msk [vmem:[#allocation2 + $0x58] sm:$0xff] %vm232_vm0, %v569_v4 }
 0x105   : > { %v889_v12 = vpack.c.bf16 %v641_v2, %v641_v2  ;;  %v626_v14 = vadd.f32 %v1148_v50, %v603_v7  ;;  %v511_v15 = vpop.f32.mrf.mxu0  ;;  %v543_v16 = vpop.f32.mrf.mxu1 }
 0x106   : > { %714 = vst.msk [vmem:[%s1158_s23] sm:$0xf] %vm713_vm4, %v881_v11  ;;  %v634_v17 = vmax.f32 %v618_v13, 0.0  ;;  %v562_v19 = vadd.f32 %v511_v15, %v253_v5  ;;  %v570_v20 = vadd.f32 %v543_v16, %v261_v10 }
 0x107   : > { %722 = vst.msk [vmem:[%s1158_s23 + $0x20] sm:$0xf] %vm713_vm4, %v889_v12  ;;  %v642_v18 = vmax.f32 %v626_v14, 0.0  ;;  %v596_v22 = vld [vmem:[#allocation2 + $0x10] sm:$0xff]  ;;  %v513_v24 = vpop.f32.mrf.mxu0  ;;  %v545_v25 = vpop.f32.mrf.mxu1 }
 0x108   : > { %v604_v23 = vld [vmem:[#allocation2 + $0x50] sm:$0xff]  ;;  %v882_v27 = vpack.c.bf16 %v634_v17, %v634_v17  ;;  %v619_v29 = vadd.f32 %v1148_v50, %v596_v22  ;;  %579 = vst.msk [vmem:[#allocation2 + $0x20] sm:$0xff] %vm232_vm0, %v562_v19  ;;  %587 = vst.msk [vmem:[#allocation2 + $0x60] sm:$0xff] %vm232_vm0, %v570_v20 }
 0x109   : > { %v890_v28 = vpack.c.bf16 %v642_v18, %v642_v18  ;;  %v627_v30 = vadd.f32 %v1148_v50, %v604_v23  ;;  %v514_v31 = vpop.f32.mrf.mxu0  ;;  %v546_v32 = vpop.f32.mrf.mxu1 }
 0x10a   : > { %715 = vst.msk [vmem:[%s1158_s23 + $0x4] sm:$0xf] %vm713_vm4, %v882_v27  ;;  %v635_v33 = vmax.f32 %v619_v29, 0.0  ;;  %v563_v35 = vadd.f32 %v514_v31, %v254_v21  ;;  %v571_v36 = vadd.f32 %v546_v32, %v262_v26 }
 0x10b   : > { %723 = vst.msk [vmem:[%s1158_s23 + $0x24] sm:$0xf] %vm713_vm4, %v890_v28  ;;  %v643_v34 = vmax.f32 %v627_v30, 0.0  ;;  %v597_v38 = vld [vmem:[#allocation2 + $0x18] sm:$0xff]  ;;  %v516_v40 = vpop.f32.mrf.mxu0  ;;  %v548_v41 = vpop.f32.mrf.mxu1 }
 0x10c   : > { %v605_v39 = vld [vmem:[#allocation2 + $0x58] sm:$0xff]  ;;  %v883_v43 = vpack.c.bf16 %v635_v33, %v635_v33  ;;  %v620_v45 = vadd.f32 %v1148_v50, %v597_v38  ;;  %580 = vst.msk [vmem:[#allocation2 + $0x28] sm:$0xff] %vm232_vm0, %v563_v35  ;;  %588 = vst.msk [vmem:[#allocation2 + $0x68] sm:$0xff] %vm232_vm0, %v571_v36 }
 0x10d   : > { %v891_v44 = vpack.c.bf16 %v643_v34, %v643_v34  ;;  %v628_v46 = vadd.f32 %v1148_v50, %v605_v39  ;;  %v519_v47 = vpop.f32.mrf.mxu0  ;;  %v551_v48 = vpop.f32.mrf.mxu1 }
 0x10e   : > { %716 = vst.msk [vmem:[%s1158_s23 + $0x8] sm:$0xf] %vm713_vm4, %v883_v43  ;;  %v636_v49 = vmax.f32 %v620_v45, 0.0  ;;  %v564_v52 = vadd.f32 %v519_v47, %v255_v37  ;;  %v572_v53 = vadd.f32 %v551_v48, %v263_v42 }
 0x10f   : > { %724 = vst.msk [vmem:[%s1158_s23 + $0x28] sm:$0xf] %vm713_vm4, %v891_v44  ;;  %v644_v51 = vmax.f32 %v628_v46, 0.0  ;;  %v598_v55 = vld [vmem:[#allocation2 + $0x20] sm:$0xff]  ;;  %v521_v57 = vpop.f32.mrf.mxu0  ;;  %v553_v58 = vpop.f32.mrf.mxu1 }
 0x110   : > { %v606_v56 = vld [vmem:[#allocation2 + $0x60] sm:$0xff]  ;;  %v884_v60 = vpack.c.bf16 %v636_v49, %v636_v49  ;;  %v621_v62 = vadd.f32 %v1148_v50, %v598_v55  ;;  %581 = vst.msk [vmem:[#allocation2 + $0x30] sm:$0xff] %vm232_vm0, %v564_v52  ;;  %589 = vst.msk [vmem:[#allocation2 + $0x70] sm:$0xff] %vm232_vm0, %v572_v53 }
 0x111   : > { %v892_v61 = vpack.c.bf16 %v644_v51, %v644_v51  ;;  %v629_v63 = vadd.f32 %v1148_v50, %v606_v56  ;;  %v522_v0 = vpop.f32.mrf.mxu0  ;;  %v554_v1 = vpop.f32.mrf.mxu1 }
 0x112   : > { %717 = vst.msk [vmem:[%s1158_s23 + $0xc] sm:$0xf] %vm713_vm4, %v884_v60  ;;  %v637_v2 = vmax.f32 %v621_v62, 0.0  ;;  %v565_v4 = vadd.f32 %v522_v0, %v256_v54  ;;  %v573_v5 = vadd.f32 %v554_v1, %v264_v59 }
 0x113   : > { %725 = vst.msk [vmem:[%s1158_s23 + $0x2c] sm:$0xf] %vm713_vm4, %v892_v61  ;;  %v645_v3 = vmax.f32 %v629_v63, 0.0  ;;  %v599_v6 = vld [vmem:[#allocation2 + $0x28] sm:$0xff]  ;;  %v524_v8 = vpop.f32.mrf.mxu0  ;;  %v556_v9 = vpop.f32.mrf.mxu1 }
 0x114   : > { %v607_v7 = vld [vmem:[#allocation2 + $0x68] sm:$0xff]  ;;  %v885_v10 = vpack.c.bf16 %v637_v2, %v637_v2  ;;  %v622_v12 = vadd.f32 %v1148_v50, %v599_v6  ;;  %582 = vst.msk [vmem:[#allocation2 + $0x38] sm:$0xff] %vm232_vm0, %v565_v4  ;;  %590 = vst.msk [vmem:[#allocation2 + $0x78] sm:$0xff] %vm232_vm0, %v573_v5 }
 0x115   : > { %v893_v11 = vpack.c.bf16 %v645_v3, %v645_v3  ;;  %v630_v13 = vadd.f32 %v1148_v50, %v607_v7 }
 0x116   : > { %718 = vst.msk [vmem:[%s1158_s23 + $0x10] sm:$0xf] %vm713_vm4, %v885_v10  ;;  %v638_v14 = vmax.f32 %v622_v12, 0.0 }
 0x117   : > { %726 = vst.msk [vmem:[%s1158_s23 + $0x30] sm:$0xf] %vm713_vm4, %v893_v11  ;;  %v646_v15 = vmax.f32 %v630_v13, 0.0  ;;  %v600_v16 = vld [vmem:[#allocation2 + $0x30] sm:$0xff] }
 0x118   : > { %v608_v17 = vld [vmem:[#allocation2 + $0x70] sm:$0xff]  ;;  %v886_v18 = vpack.c.bf16 %v638_v14, %v638_v14  ;;  %v623_v20 = vadd.f32 %v1148_v50, %v600_v16 }
 0x119   : > { %v894_v19 = vpack.c.bf16 %v646_v15, %v646_v15  ;;  %v631_v21 = vadd.f32 %v1148_v50, %v608_v17 }
 0x11a   : > { %719 = vst.msk [vmem:[%s1158_s23 + $0x14] sm:$0xf] %vm713_vm4, %v886_v18  ;;  %v639_v22 = vmax.f32 %v623_v20, 0.0 }
 0x11b   : > { %727 = vst.msk [vmem:[%s1158_s23 + $0x34] sm:$0xf] %vm713_vm4, %v894_v19  ;;  %v647_v23 = vmax.f32 %v631_v21, 0.0  ;;  %v601_v24 = vld [vmem:[#allocation2 + $0x38] sm:$0xff] }
 0x11c   : > { %v609_v25 = vld [vmem:[#allocation2 + $0x78] sm:$0xff]  ;;  %v887_v26 = vpack.c.bf16 %v639_v22, %v639_v22  ;;  %v624_v28 = vadd.f32 %v1148_v50, %v601_v24 }
 0x11d   : > { %v895_v27 = vpack.c.bf16 %v647_v23, %v647_v23  ;;  %v632_v29 = vadd.f32 %v1148_v50, %v609_v25 }
 0x11e   : > { %720 = vst.msk [vmem:[%s1158_s23 + $0x18] sm:$0xf] %vm713_vm4, %v887_v26  ;;  %v640_v30 = vmax.f32 %v624_v28, 0.0 }
 0x11f   : > { %728 = vst.msk [vmem:[%s1158_s23 + $0x38] sm:$0xf] %vm713_vm4, %v895_v27  ;;  %v648_v31 = vmax.f32 %v632_v29, 0.0 }
 0x120   : > { %v888_v32 = vpack.c.bf16 %v640_v30, %v640_v30 }
 0x121   : > { %v896_v33 = vpack.c.bf16 %v648_v31, %v648_v31 }
 0x122   : > { %721 = vst.msk [vmem:[%s1158_s23 + $0x1c] sm:$0xf] %vm713_vm4, %v888_v32 }
 0x123   : > { %729 = vst.msk [vmem:[%s1158_s23 + $0x3c] sm:$0xf] %vm713_vm4, %v896_v33 }
 0x124 PF: > { %s13_s14 = sadd.s32 1, %s1000_s14   ;;  %s1229_s12 = smov %s996_s13 }
 0x125   : > { %p10_p5 = scmp.ge.s32.totalorder %s13_s14, 6   ;;  %s1230_s13 = smov %s1232_s15 }
 0x127   :  { %12 = sbr.rel (!%p10_p5) target bundleno = 2 (0x2), region = 73 }

</bundles_post_ra>
